<compile_context>
chip_gen: v5e
topology: v5e:2x2
jax: 0.10.0
libtpu: 0.0.40
codegen_flags: <defaults>
</compile_context>

<pallas_src>
import jax
import jax.numpy as jnp
from jax.experimental import pallas as pl
from jax.experimental.pallas import tpu as pltpu

INPUT_SIZE = 32
HIDDEN_SIZE = 32
NUM_CLASSES = 1


def mlp_kernel(x_ref, w1_ref, b1_ref, w2_ref, b2_ref, w3_ref, b3_ref, o_ref):
    # fc1 + ReLU  (MXU matmul, f32 accumulation; bias/activation in f32)
    x = x_ref[...]
    h1 = jnp.dot(x, w1_ref[...], preferred_element_type=jnp.float32)
    h1 = jnp.maximum(h1 + b1_ref[...], 0.0)

    # fc2 + Sigmoid (cast activation to the weight dtype so a bf16 weight path
    # uses the bf16 MXU; no-op cast for the f32 path). Sigmoid runs on the EUP.
    h2 = jnp.dot(h1.astype(w2_ref.dtype), w2_ref[...],
                 preferred_element_type=jnp.float32)
    h2 = jax.nn.sigmoid(h2 + b2_ref[...])

    # fc3 (num_classes == 1): VPU broadcast-multiply + XLU lane reduction instead
    # of an N=1 MXU matmul; b3 is an SMEM scalar.
    out = jnp.sum(h2 * w3_ref[...], axis=-1, keepdims=True) + b3_ref[0]
    o_ref[...] = out.astype(o_ref.dtype)


def prepare_params(w1, b1, w2, b2, w3, b3, compute_dtype=jnp.float32):
    """One-time conversion of PyTorch-convention params ([out, in] weights) into
    the kernel layout. Call once at init; per-call forward has no glue HLOs."""
    assert w3.shape[0] == NUM_CLASSES == 1, "VPU fc3 path assumes num_classes == 1"
    w1t = jnp.asarray(w1, compute_dtype).T                       # [in, hidden]
    w2t = jnp.asarray(w2, compute_dtype).T                       # [hidden, hidden]
    b1r = jnp.asarray(b1, jnp.float32).reshape(1, HIDDEN_SIZE)   # lane-width-32 row
    b2r = jnp.asarray(b2, jnp.float32).reshape(1, HIDDEN_SIZE)
    w3r = jnp.asarray(w3, jnp.float32).reshape(1, HIDDEN_SIZE)   # row for VPU reduce
    b3s = jnp.asarray(b3, jnp.float32).reshape(NUM_CLASSES)      # SMEM scalar
    return (w1t, b1r, w2t, b2r, w3r, b3s)


def neural_net_forward(x, params, *, block_b=512):
    """x: [B, input_size] (f32 or bf16); params: output of prepare_params."""
    w1t, b1r, w2t, b2r, w3r, b3s = params
    B = x.shape[0]
    # Large batch tiles: per-grid-step overhead ~0.35us, so keep tiles big.
    # (VMEM use at tb=512 is ~150 KiB double-buffered — far below v7x's 32 MiB
    #  scoped limit; set vmem_limit_bytes only if block_b is pushed much higher.)
    tb = min(block_b, B)
    nb = pl.cdiv(B, tb)

    const = lambda arr: pl.BlockSpec(arr.shape, lambda i: (0, 0))  # VMEM-resident

    return pl.pallas_call(
        mlp_kernel,
        out_shape=jax.ShapeDtypeStruct((B, NUM_CLASSES), jnp.float32),
        grid=(nb,),
        in_specs=[
            pl.BlockSpec((tb, INPUT_SIZE), lambda i: (i, 0)),      # batch-tiled x
            const(w1t), const(b1r),
            const(w2t), const(b2r),
            const(w3r),
            pl.BlockSpec(memory_space=pltpu.MemorySpace.SMEM),     # b3 scalar
        ],
        out_specs=pl.BlockSpec((tb, NUM_CLASSES), lambda i: (i, 0)),
        compiler_params=pltpu.CompilerParams(
            dimension_semantics=("parallel",),                     # 2 TCs on v7x
        ),
    )(x, w1t, b1r, w2t, b2r, w3r, b3s)


def init_params(key):
    """Deterministic synthetic init matching nn.Linear shapes ([out, in] weights)."""
    ks = jax.random.split(key, 6)

    def lin(kw, kb, fan_in, fan_out):
        bound = 1.0 / jnp.sqrt(fan_in)
        w = jax.random.uniform(kw, (fan_out, fan_in), jnp.float32, -bound, bound)
        b = jax.random.uniform(kb, (fan_out,), jnp.float32, -bound, bound)
        return w, b

    w1, b1 = lin(ks[0], ks[1], INPUT_SIZE, HIDDEN_SIZE)
    w2, b2 = lin(ks[2], ks[3], HIDDEN_SIZE, HIDDEN_SIZE)
    w3, b3 = lin(ks[4], ks[5], HIDDEN_SIZE, NUM_CLASSES)
    return w1, b1, w2, b2, w3, b3


if __name__ == "__main__":
    key = jax.random.PRNGKey(0)
    kx, kp = jax.random.split(key)
    batch = 8
    x = jax.random.normal(kx, (batch, INPUT_SIZE), jnp.float32)
    w1, b1, w2, b2, w3, b3 = init_params(kp)

    # Reference in plain JAX (same math as the PyTorch forward).
    h1 = jnp.maximum(x @ w1.T + b1, 0.0)
    h2 = jax.nn.sigmoid(h1 @ w2.T + b2)
    ref = h2 @ w3.T + b3

    # f32 path (default semantics, matches PyTorch f32 forward).
    params_f32 = prepare_params(w1, b1, w2, b2, w3, b3, jnp.float32)
    out = jax.block_until_ready(neural_net_forward(x, params_f32))
    assert out.shape == (batch, NUM_CLASSES)
    assert jnp.allclose(out, ref, atol=1e-5, rtol=1e-5)

    # bf16-input/weight path (v6e/v7x: bf16 MXU + half the x HBM bytes),
    # f32 accumulation and f32 elementwise — looser tolerance.
    params_bf16 = prepare_params(w1, b1, w2, b2, w3, b3, jnp.bfloat16)
    out_bf16 = jax.block_until_ready(
        neural_net_forward(x.astype(jnp.bfloat16), params_bf16))
    assert out_bf16.shape == (batch, NUM_CLASSES)
    assert jnp.allclose(out_bf16, ref, atol=5e-2, rtol=5e-2)

    print("KERNEL_OK")
</pallas_src>

<mosaic_0001>
module attributes {stable_mosaic.version = 11 : i64} {
  func.func @mlp_kernel(%arg0: i32, %arg1: memref<8x32xf32, #tpu.memory_space<vmem>>, %arg2: memref<32x32xf32, #tpu.memory_space<vmem>>, %arg3: memref<1x32xf32, #tpu.memory_space<vmem>>, %arg4: memref<32x32xf32, #tpu.memory_space<vmem>>, %arg5: memref<1x32xf32, #tpu.memory_space<vmem>>, %arg6: memref<1x32xf32, #tpu.memory_space<vmem>>, %arg7: memref<1xf32, #tpu.memory_space<smem>>, %arg8: memref<8x1xf32, #tpu.memory_space<vmem>>) attributes {dimension_semantics = [#tpu.dimension_semantics<parallel>], iteration_bounds = array<i64: 1>, scalar_prefetch = 0 : i64, scratch_operands = 0 : i64, tpu.core_type = #tpu.core_type<tc>, window_params = [{transform_indices = @transform_0, window_bounds = array<i64: 8, 32>}, {pipeline_mode = #tpu.pipeline_mode<synchronous>, transform_indices = @transform_1, window_bounds = array<i64: 32, 32>}, {pipeline_mode = #tpu.pipeline_mode<synchronous>, transform_indices = @transform_2, window_bounds = array<i64: 1, 32>}, {pipeline_mode = #tpu.pipeline_mode<synchronous>, transform_indices = @transform_3, window_bounds = array<i64: 32, 32>}, {pipeline_mode = #tpu.pipeline_mode<synchronous>, transform_indices = @transform_4, window_bounds = array<i64: 1, 32>}, {pipeline_mode = #tpu.pipeline_mode<synchronous>, transform_indices = @transform_5, window_bounds = array<i64: 1, 32>}, {transform_indices = @transform_6, window_bounds = array<i64: 1>}, {transform_indices = @transform_7, window_bounds = array<i64: 8, 1>}]} {
    %c0 = arith.constant 0 : index
    %c0_0 = arith.constant 0 : index
    %0 = vector.load %arg1[%c0, %c0_0] : memref<8x32xf32, #tpu.memory_space<vmem>>, vector<8x32xf32>
    %c0_1 = arith.constant 0 : index
    %c0_2 = arith.constant 0 : index
    %1 = vector.load %arg2[%c0_1, %c0_2] : memref<32x32xf32, #tpu.memory_space<vmem>>, vector<32x32xf32>
    %cst = arith.constant dense<0.000000e+00> : vector<8x32xf32>
    %2 = tpu.matmul %0, %1, %cst {dimension_numbers = #tpu.dot_dimension_numbers<[1], [0], [0], [1], [0, 0, 1, 1], [], []>} : vector<8x32xf32>, vector<32x32xf32>, vector<8x32xf32> -> vector<8x32xf32>
    %c0_3 = arith.constant 0 : index
    %c0_4 = arith.constant 0 : index
    %3 = vector.load %arg3[%c0_3, %c0_4] : memref<1x32xf32, #tpu.memory_space<vmem>>, vector<1x32xf32>
    %4 = vector.broadcast %3 : vector<1x32xf32> to vector<8x32xf32>
    %5 = arith.addf %2, %4 : vector<8x32xf32>
    %cst_5 = arith.constant 0.000000e+00 : f32
    %6 = vector.broadcast %cst_5 : f32 to vector<8x32xf32>
    %7 = arith.maximumf %5, %6 : vector<8x32xf32>
    %c0_6 = arith.constant 0 : index
    %c0_7 = arith.constant 0 : index
    %8 = vector.load %arg4[%c0_6, %c0_7] : memref<32x32xf32, #tpu.memory_space<vmem>>, vector<32x32xf32>
    %cst_8 = arith.constant dense<0.000000e+00> : vector<8x32xf32>
    %9 = tpu.matmul %7, %8, %cst_8 {dimension_numbers = #tpu.dot_dimension_numbers<[1], [0], [0], [1], [0, 0, 1, 1], [], []>} : vector<8x32xf32>, vector<32x32xf32>, vector<8x32xf32> -> vector<8x32xf32>
    %c0_9 = arith.constant 0 : index
    %c0_10 = arith.constant 0 : index
    %10 = vector.load %arg5[%c0_9, %c0_10] : memref<1x32xf32, #tpu.memory_space<vmem>>, vector<1x32xf32>
    %11 = vector.broadcast %10 : vector<1x32xf32> to vector<8x32xf32>
    %12 = arith.addf %9, %11 : vector<8x32xf32>
    %13 = arith.negf %12 : vector<8x32xf32>
    %14 = math.exp %13 : vector<8x32xf32>
    %cst_11 = arith.constant 1.000000e+00 : f32
    %15 = vector.broadcast %cst_11 : f32 to vector<8x32xf32>
    %16 = arith.addf %15, %14 : vector<8x32xf32>
    %17 = arith.divf %15, %16 : vector<8x32xf32>
    %c0_12 = arith.constant 0 : index
    %c0_13 = arith.constant 0 : index
    %18 = vector.load %arg6[%c0_12, %c0_13] : memref<1x32xf32, #tpu.memory_space<vmem>>, vector<1x32xf32>
    %19 = vector.broadcast %18 : vector<1x32xf32> to vector<8x32xf32>
    %20 = arith.mulf %17, %19 : vector<8x32xf32>
    %cst_14 = arith.constant dense<0.000000e+00> : vector<8xf32>
    %21 = vector.multi_reduction <add>, %20, %cst_14 [1] : vector<8x32xf32> to vector<8xf32>
    %22 = vector.shape_cast %21 : vector<8xf32> to vector<8x1xf32>
    %c0_15 = arith.constant 0 : index
    %23 = memref.load %arg7[%c0_15] : memref<1xf32, #tpu.memory_space<smem>>
    %24 = vector.broadcast %23 : f32 to vector<8x1xf32>
    %25 = arith.addf %22, %24 : vector<8x1xf32>
    %c0_16 = arith.constant 0 : index
    %c0_17 = arith.constant 0 : index
    %26 = vector.load %arg8[%c0_16, %c0_17] : memref<8x1xf32, #tpu.memory_space<vmem>>, vector<8x1xf32>
    tpu.vector_store %arg8[%c0_16, %c0_17], %25 {strides = array<i32>} : memref<8x1xf32, #tpu.memory_space<vmem>>, vector<8x1xf32>,
    return
  }
  func.func @transform_0(%arg0: i32) -> (i32, i32) {
    %c0_i32 = arith.constant 0 : i32
    %c0_i32_0 = arith.constant 0 : i32
    return %arg0, %c0_i32 : i32, i32
  }
  func.func @transform_1(%arg0: i32) -> (i32, i32) {
    %c0_i32 = arith.constant 0 : i32
    %c0_i32_0 = arith.constant 0 : i32
    %c0_i32_1 = arith.constant 0 : i32
    return %c0_i32, %c0_i32_0 : i32, i32
  }
  func.func @transform_2(%arg0: i32) -> (i32, i32) {
    %c0_i32 = arith.constant 0 : i32
    %c0_i32_0 = arith.constant 0 : i32
    %c0_i32_1 = arith.constant 0 : i32
    return %c0_i32, %c0_i32_0 : i32, i32
  }
  func.func @transform_3(%arg0: i32) -> (i32, i32) {
    %c0_i32 = arith.constant 0 : i32
    %c0_i32_0 = arith.constant 0 : i32
    %c0_i32_1 = arith.constant 0 : i32
    return %c0_i32, %c0_i32_0 : i32, i32
  }
  func.func @transform_4(%arg0: i32) -> (i32, i32) {
    %c0_i32 = arith.constant 0 : i32
    %c0_i32_0 = arith.constant 0 : i32
    %c0_i32_1 = arith.constant 0 : i32
    return %c0_i32, %c0_i32_0 : i32, i32
  }
  func.func @transform_5(%arg0: i32) -> (i32, i32) {
    %c0_i32 = arith.constant 0 : i32
    %c0_i32_0 = arith.constant 0 : i32
    %c0_i32_1 = arith.constant 0 : i32
    return %c0_i32, %c0_i32_0 : i32, i32
  }
  func.func @transform_6(%arg0: i32) -> i32 {
    %c0_i32 = arith.constant 0 : i32
    %c0_i32_0 = arith.constant 0 : i32
    return %c0_i32 : i32
  }
  func.func @transform_7(%arg0: i32) -> (i32, i32) {
    %c0_i32 = arith.constant 0 : i32
    %c0_i32_0 = arith.constant 0 : i32
    return %arg0, %c0_i32 : i32, i32
  }
}

</mosaic_0001>

<bundles_post_ra>
// kernel: tpu_custom_call.1
= control target key start
LH: loop header
LB: loop body
LE: loop exit
PB: predicated region body
PF: predicated region fallthrough
CT: control target
= control target key end

     0   :  { %13 = vsyncpa [#allocation4], 0  ;;  %s338_s0 = inlined_call_operand.hbm [shape: f32[8,32], index: 0, kind: input, shape index: {}]   ;;  %s339_s1 = inlined_call_operand.hbm [shape: f32[32,32], index: 1, kind: input, shape index: {}]   ;;  %s340_s2 = inlined_call_operand.vmem [shape: f32[1,32], index: 2, kind: input, shape index: {}]   ;;  %s341_s3 = inlined_call_operand.hbm [shape: f32[32,32], index: 3, kind: input, shape index: {}]   ;;  %s342_s4 = inlined_call_operand.vmem [shape: f32[1,32], index: 4, kind: input, shape index: {}]   ;;  %s343_s5 = inlined_call_operand.vmem [shape: f32[1,32], index: 5, kind: input, shape index: {}]   ;;  %s344_s6 = inlined_call_operand.<no memory space> [shape: f32[1], index: 6, kind: input, shape index: {}]   ;;  %s345_s7 = inlined_call_operand.vmem [shape: f32[8,1], index: 7, kind: output, shape index: {}]  }
   0x1   :  { %14 = vsyncpa [#allocation6], 0  ;;  %s30_s26 = sshll.u32 %s339_s1, 4  ;;  %s266_s27 = smov [#allocation5]   ;;  %s31_s26 = int_to_ptr.hbm [resolvable:$true] %s30_s26 }
   0x2   :  { %s32_s28 = sshll.u32 %s266_s27, 4  ;;  %s20_s8 = sshll.u32 %s338_s0, 4  ;;  %s33_s28 = int_to_ptr.vmem [resolvable:$true] %s32_s28  ;;  %s21_s8 = int_to_ptr.hbm [resolvable:$true] %s20_s8 }
   0x3   :  { %s267_s9 = smov 128   ;;  %s268_s10 = smov 8  }
   0x4   :  { %38 = dma.hbm_to_vmem [thread:$0]  %s31_s26, 512, %s33_s28, [#allocation6], %s267_s9, %s267_s9, %s268_s10  }
   0x5   :  { %s269_s11 = smov [#allocation3]   ;;  %s45_s15 = sshll.u32 %s341_s3, 4  ;;  %s46_s15 = int_to_ptr.hbm [resolvable:$true] %s45_s15 }
   0x6   :  { %s22_s12 = sshll.u32 %s269_s11, 4  ;;  %s270_s1 = smov [#allocation7]   ;;  %s23_s12 = int_to_ptr.vmem [resolvable:$true] %s22_s12 }
   0x7   :  { %25 = dma.hbm_to_vmem [thread:$0]  %s21_s8, 128, %s23_s12, [#allocation4]  }
   0x8   :  { %s47_s16 = sshll.u32 %s270_s1, 4  ;;  %s48_s16 = int_to_ptr.vmem [resolvable:$true] %s47_s16 }
   0x9   :  { %53 = dma.hbm_to_vmem [thread:$0]  %s46_s15, 512, %s48_s16, [#allocation6], %s267_s9, %s267_s9, %s268_s10  }
   0xa   :  { %262 = dma.done.wait [#allocation4], 128  }
   0xb   :  { %263 = vsyncadd [#allocation4], 4294967168 }
   0xc   :  { %264 = dma.done.wait [#allocation6], 1024  }
   0xd   :  { %265 = vsyncadd [#allocation6], 4294966272  ;;  %v76_v0 = vld [vmem:[#allocation5 + $0x18] sm:$0xff]  ;;  %v75_v1 = vld [vmem:[#allocation5 + $0x10] sm:$0xff]  ;;  %vm81_vm0 = vcmask 261120   ;;  %v165_v32 = vstv %s344_s6  ;;  %vm167_vm5 = vcmask 7168  }
   0xe   :  { %97 = vmatpush.msra.mxu0 %v76_v0  ;;  %v109_v2 = vld [vmem:[#allocation7 + $0x18] sm:$0xff]  ;;  %v74_v3 = vld [vmem:[#allocation5 + $0x8] sm:$0xff]  ;;  %v73_v4 = vld [vmem:[#allocation5] sm:$0xff] }
   0xf   :  { %129 = vmatpush.msra.mxu1 %v109_v2  ;;  %v72_v5 = vld [vmem:[#allocation3] sm:$0xff]  ;;  %v108_v6 = vld [vmem:[#allocation7 + $0x10] sm:$0xff]  ;;  %v107_v7 = vld [vmem:[#allocation7 + $0x8] sm:$0xff] }
  0x10   :  { %98 = vmatpush.msra.mxu0 %v75_v1  ;;  %v106_v8 = vld [vmem:[#allocation7] sm:$0xff]  ;;  %v183_v9 = vld [vmem:[%s340_s2] ss:$0 sm:$0xff] }
  0x11   :  { %130 = vmatpush.msra.mxu1 %v108_v6  ;;  %v184_v13 = vld [vmem:[%s342_s4] ss:$0 sm:$0xff] }
  0x12   :  { %99 = vmatpush.msra.mxu0 %v74_v3  ;;  %v185_v26 = vld [vmem:[%s343_s5] ss:$0 sm:$0xff] }
  0x13   :  { %131 = vmatpush.msra.mxu1 %v107_v7 }
  0x14   :  { %100 = vmatpush.msra.mxu0 %v73_v4 }
  0x15   :  { %175 = vmatmul.msk.f32.vlgmr.msra.gmra.mxu0 %vm81_vm0, %v72_v5  ;;  %132 = vmatpush.msra.mxu1 %v106_v8 }
  0x92   :  { %v102_v10 = vpop.f32.mrf.mxu0 }
  0x93   :  { %v103_v11 = vadd.f32 %v183_v9, %v102_v10 }
  0x95   :  { %v105_v12 = vmax.f32 %v103_v11, 0.0 }
  0x97   :  { %176 = vmatmul.msk.f32.vlgmr.msra.gmra.mxu1 %vm81_vm0, %v105_v12 }
 0x114   :  { %v134_v14 = vpop.f32.mrf.mxu1 }
 0x115   :  { %v135_v15 = vadd.f32 %v184_v13, %v134_v14 }
 0x117   :  { %v177_v16 = vmul.f32 -1.442695, %v135_v15 }
 0x119   :  { %186 = vpow2.f32 %v177_v16 }
 0x11f   :  { %v187_v17 = vpop.eup %186 }
 0x120   :  { %v140_v18 = vadd.f32 1.0, %v187_v17 }
 0x122   :  { %188 = vrcp.f32 %v140_v18  ;;  %v152_v22 = vand.u32 2147483648, %v140_v18  ;;  %v150_v24 = vand.u32 2147483647, %v140_v18  ;;  %vm146_vm2 = vweird.f32 %v140_v18 }
 0x124   :  { %v153_v27 = vor.u32 1.1754944e-38, %v152_v22  ;;  %vm151_vm4 = vcmp.eq.f32.partialorder %v150_v24, 8.507059e+37 }
 0x128   :  { %v189_v19 = vpop.eup %188 }
 0x129   :  { %v142_v20 = vmul.f32 %v189_v19, %v140_v18  ;;  %vm147_vm1 = vweird.f32 %v189_v19 }
 0x12a   :  { %vm148_vm3 = vmor %vm146_vm2, %vm147_vm1 }
 0x12b   :  { %v143_v21 = vsub.f32 1.0, %v142_v20 }
 0x12d   :  { %v144_v23 = vmul.f32 %v189_v19, %v143_v21 }
 0x12f   :  { %v145_v25 = vadd.f32 %v189_v19, %v144_v23 }
 0x131   :  { %v149_v28 = vsel %vm148_vm3, %v189_v19, %v145_v25 }
 0x132   :  { %v154_v29 = vsel %vm151_vm4, %v153_v27, %v149_v28 }
 0x133   :  { %v160_v30 = vmul.f32 %v185_v26, %v154_v29 }
 0x135   :  { %v161_v31 = vsel %vm81_vm0, %v160_v30, 0.0 }
 0x136   :  { %162 = vadd.xlane.f32.xlu0 %v161_v31 }
 0x1a9   :  { %v163_v33 = vpop.xlane.xlu0 %162 }
 0x1aa   :  { %v166_v34 = vadd.f32 %v165_v32, %v163_v33 }
 0x1ac   :  { %168 = vst.msk [vmem:[%s345_s7] sm:$0xff] %vm167_vm5, %v166_v34 }
 0x1ad   :  { %173 = vsyncpa [#allocation4], 1 }
 0x1ae   :  { %174 = vsyncpa [#allocation6], 1 }

</bundles_post_ra>
